<compile_context>
chip_gen: v7x
topology: tpu7x:2x2x1
jax: 0.10.0
libtpu: 0.0.40
codegen_flags: <defaults>
</compile_context>

<pallas_src>
import functools

import jax
import jax.numpy as jnp
from jax.experimental import pallas as pl
from jax.experimental.pallas import tpu as pltpu

QMODE_DET = "det"
QMODE_STOCH = "stoch"

LANES = 128
SUBLANES = 8
MAX_BLOCK_ROWS = 2048          # (2048,128) f32 tile = 1 MiB; ~85% HBM roofline


# ---------------------------------------------------------------------------
# Hardware queries (defensive: fall back gracefully off-TPU / interpret mode).
# ---------------------------------------------------------------------------
def _vmem_budget_bytes():
    try:
        cap = pltpu.get_tpu_info().vmem_capacity_bytes   # 128 MiB v5e/v6e, 64 MiB v7x
    except Exception:
        cap = 64 * 1024 * 1024                           # conservative fallback
    return (cap * 3) // 4                                # headroom for Mosaic scratch


def _num_tensorcores():
    try:
        info = pltpu.get_tpu_info()
    except Exception:
        return 1
    for attr in ("num_tensorcores", "tensorcores_per_chip", "num_cores",
                 "core_count", "num_available_cores"):
        v = getattr(info, attr, None)
        if isinstance(v, int) and 1 <= v <= 8:
            return min(v, 2)
    return 1


# ---------------------------------------------------------------------------
# Fused single-pass kernels (whole tensor resident in VMEM, one read + write).
# ---------------------------------------------------------------------------
def _fused_det_kernel(x_ref, o_ref, *, levels, lo, hi):
    x = x_ref[...].astype(jnp.float32)
    # Constant tensors (max == min) give scale = inf, matching PyTorch.
    scale = levels / (jnp.max(x) - jnp.min(x))
    y = jnp.clip(x * scale, lo, hi)
    o_ref[...] = (jnp.round(y) / scale).astype(o_ref.dtype)


def _fused_stoch_kernel(x_ref, noise_ref, o_ref, *, levels, lo, hi):
    x = x_ref[...].astype(jnp.float32)
    scale = levels / (jnp.max(x) - jnp.min(x))
    y = jnp.clip(x * scale, lo, hi)
    o_ref[...] = ((jnp.round(y - 0.5) + noise_ref[...]) / scale).astype(o_ref.dtype)


# ---------------------------------------------------------------------------
# Two-pass path, pass 1: global min / max.
# Grid = (ncores, inner).  Each core accumulates an (8,128) elementwise
# running min/max in its resident output block (pure VPU work, no per-step
# full XLU reduce).  The collapse to scalars happens inside the pass-2 kernel.
# NOTE: bf16 inputs could accumulate in bf16 on v6e/v7x (exact selection);
# kept f32 for simplicity — pass 1 is DMA-bound either way.
# ---------------------------------------------------------------------------
def _minmax_kernel(x_ref, min_ref, max_ref):
    j = pl.program_id(1)

    @pl.when(j == 0)
    def _():
        min_ref[...] = jnp.full_like(min_ref, jnp.inf)
        max_ref[...] = jnp.full_like(max_ref, -jnp.inf)

    x = x_ref[...].astype(jnp.float32).reshape(-1, SUBLANES, LANES)
    min_ref[...] = jnp.minimum(min_ref[...], jnp.min(x, axis=0))
    max_ref[...] = jnp.maximum(max_ref[...], jnp.max(x, axis=0))


# ---------------------------------------------------------------------------
# Two-pass path, pass 2: elementwise quantization.  scale is recomputed from
# the tiny (ncores*8,128) partials each step (free XLU slack; avoids wrapper
# glue ops between the two pallas_calls).
# ---------------------------------------------------------------------------
def _quant_det_kernel(min_ref, max_ref, x_ref, o_ref, *, levels, lo, hi):
    scale = levels / (jnp.max(max_ref[...]) - jnp.min(min_ref[...]))
    y = jnp.clip(x_ref[...].astype(jnp.float32) * scale, lo, hi)
    o_ref[...] = (jnp.round(y) / scale).astype(o_ref.dtype)


def _quant_stoch_kernel(min_ref, max_ref, x_ref, noise_ref, o_ref, *, levels, lo, hi):
    scale = levels / (jnp.max(max_ref[...]) - jnp.min(min_ref[...]))
    y = jnp.clip(x_ref[...].astype(jnp.float32) * scale, lo, hi)
    o_ref[...] = ((jnp.round(y - 0.5) + noise_ref[...]) / scale).astype(o_ref.dtype)


# ---------------------------------------------------------------------------
# Helpers.
# ---------------------------------------------------------------------------
def _pick_block_rows(rows):
    """Largest divisor of `rows` that is a multiple of 8 and <= MAX_BLOCK_ROWS."""
    d = min(MAX_BLOCK_ROWS, rows)
    d -= d % SUBLANES
    while d >= SUBLANES:
        if rows % d == 0:
            return d
        d -= SUBLANES
    raise AssertionError("rows must be a multiple of 8")


# ---------------------------------------------------------------------------
# Python wrapper.
# ---------------------------------------------------------------------------
def quantize(x, qmode=QMODE_DET, num_bits=4, seed=0, force_two_pass=False):
    orig_shape = x.shape
    orig_dtype = x.dtype

    n = x.size
    # TODO(synk): pad-and-mask path for arbitrary sizes (padding would bias the
    # global min/max, so it needs a masked pass-1 reduction).
    assert n % (SUBLANES * LANES) == 0, "numel must be a multiple of 1024 (8*128)"

    rows = n // LANES
    x2d = x.reshape(rows, LANES)               # original dtype end-to-end

    levels = 2.0 ** num_bits - 1.0
    lo = -(2.0 ** (num_bits - 1) + 1.0)
    hi = 2.0 ** (num_bits - 1)

    stoch = (qmode != QMODE_DET)
    noise2d = None
    if stoch:
        # Matches torch.rand(output.size()); shared by fused & two-pass paths.
        noise2d = jax.random.uniform(jax.random.PRNGKey(seed), (rows, LANES),
                                     dtype=jnp.float32)

    # ---- fused single-pass path (tensor + temporaries fit in VMEM) ---------
    budget = _vmem_budget_bytes()
    itemsize = x.dtype.itemsize
    est_bytes = n * (2 * itemsize + 3 * 4 + (4 if stoch else 0))
    if est_bytes <= budget and not force_two_pass:
        vmem_spec = pl.BlockSpec(memory_space=pltpu.MemorySpace.VMEM)
        params = pltpu.CompilerParams(vmem_limit_bytes=int(budget))
        if not stoch:
            out2d = pl.pallas_call(
                functools.partial(_fused_det_kernel, levels=levels, lo=lo, hi=hi),
                out_shape=jax.ShapeDtypeStruct((rows, LANES), orig_dtype),
                in_specs=[vmem_spec],
                out_specs=vmem_spec,
                compiler_params=params,
            )(x2d)
        else:
            out2d = pl.pallas_call(
                functools.partial(_fused_stoch_kernel, levels=levels, lo=lo, hi=hi),
                out_shape=jax.ShapeDtypeStruct((rows, LANES), orig_dtype),
                in_specs=[vmem_spec, vmem_spec],
                out_specs=vmem_spec,
                compiler_params=params,
            )(x2d, noise2d)
        return out2d.reshape(orig_shape)

    # ---- two-pass path (large tensors) --------------------------------------
    block_rows = _pick_block_rows(rows)
    n_blocks = rows // block_rows

    cores = _num_tensorcores()
    ncores = cores if (cores > 1 and n_blocks % cores == 0 and n_blocks >= cores) else 1
    inner = n_blocks // ncores
    if ncores > 1:
        semantics = (pltpu.CORE_PARALLEL, pltpu.ARBITRARY)
    else:
        semantics = (pltpu.ARBITRARY, pltpu.ARBITRARY)

    tile_spec = pl.BlockSpec((block_rows, LANES), lambda c, j: (c * inner + j, 0))
    mm_spec = pl.BlockSpec((ncores * SUBLANES, LANES), lambda c, j: (0, 0))

    # pass 1: per-core (8,128) running min/max partials
    mins, maxs = pl.pallas_call(
        _minmax_kernel,
        out_shape=(
            jax.ShapeDtypeStruct((ncores * SUBLANES, LANES), jnp.float32),
            jax.ShapeDtypeStruct((ncores * SUBLANES, LANES), jnp.float32),
        ),
        grid=(ncores, inner),
        in_specs=[tile_spec],
        out_specs=(
            pl.BlockSpec((SUBLANES, LANES), lambda c, j: (c, 0)),
            pl.BlockSpec((SUBLANES, LANES), lambda c, j: (c, 0)),
        ),
        compiler_params=pltpu.CompilerParams(dimension_semantics=semantics),
    )(x2d)

    # pass 2: elementwise quantize (scale computed in-kernel from partials)
    if not stoch:
        out2d = pl.pallas_call(
            functools.partial(_quant_det_kernel, levels=levels, lo=lo, hi=hi),
            out_shape=jax.ShapeDtypeStruct((rows, LANES), orig_dtype),
            grid=(ncores, inner),
            in_specs=[mm_spec, mm_spec, tile_spec],
            out_specs=tile_spec,
            compiler_params=pltpu.CompilerParams(dimension_semantics=semantics),
        )(mins, maxs, x2d)
    else:
        out2d = pl.pallas_call(
            functools.partial(_quant_stoch_kernel, levels=levels, lo=lo, hi=hi),
            out_shape=jax.ShapeDtypeStruct((rows, LANES), orig_dtype),
            grid=(ncores, inner),
            in_specs=[mm_spec, mm_spec, tile_spec, tile_spec],
            out_specs=tile_spec,
            compiler_params=pltpu.CompilerParams(dimension_semantics=semantics),
        )(mins, maxs, x2d, noise2d)

    return out2d.reshape(orig_shape)


class Quantize:
    """JAX/Pallas equivalent of the PyTorch Quantize nn.Module."""

    def __init__(self, qmode: str, num_bits: int):
        self.qmode = qmode
        self.num_bits = num_bits

    def __call__(self, x, seed=0):
        return quantize(x, self.qmode, self.num_bits, seed=seed)


# ---------------------------------------------------------------------------
# Pure-JAX reference for verification (deterministic rounding).
# ---------------------------------------------------------------------------
def _ref_quantize(x, num_bits=4):
    xf = x.astype(jnp.float32)
    scale = (2.0 ** num_bits - 1.0) / (jnp.max(xf) - jnp.min(xf))
    y = jnp.clip(xf * scale, -(2.0 ** (num_bits - 1) + 1.0), 2.0 ** (num_bits - 1))
    return (jnp.round(y) / scale).astype(x.dtype)


if __name__ == "__main__":
    key = jax.random.PRNGKey(0)
    # NCHW input, as the PyTorch module would see (conv weights/activations).
    x = jax.random.normal(key, (2, 4, 16, 16), dtype=jnp.float32)
    ref = _ref_quantize(x, num_bits=4)

    # 1) Deterministic, fused single-pass path (small tensor -> VMEM-resident).
    quant = Quantize(QMODE_DET, num_bits=4)
    out_fused = jax.block_until_ready(quant(x))
    assert out_fused.shape == x.shape and out_fused.dtype == x.dtype
    assert jnp.allclose(out_fused, ref, atol=1e-5, rtol=1e-5), "fused DET mismatch"

    # 2) Deterministic, two-pass path (forced, exercises the large-tensor code).
    out_2p = jax.block_until_ready(
        quantize(x, QMODE_DET, num_bits=4, force_two_pass=True))
    assert jnp.allclose(out_2p, ref, atol=1e-5, rtol=1e-5), "two-pass DET mismatch"

    # 3) Stochastic rounding, both paths: result must stay within ~one
    #    quantization step of the deterministic output.
    scale = (2.0 ** 4 - 1.0) / (jnp.max(x) - jnp.min(x))
    for force in (False, True):
        out_st = jax.block_until_ready(
            quantize(x, QMODE_STOCH, num_bits=4, seed=42, force_two_pass=force))
        assert out_st.shape == x.shape and bool(jnp.all(jnp.isfinite(out_st)))
        assert float(jnp.max(jnp.abs(out_st - ref))) <= float(1.5 / scale) + 1e-5

    # 4) Larger tensor: exercises the multi-block two-pass reduction.
    xl = jax.random.normal(jax.random.PRNGKey(1), (4, 8, 128, 128), dtype=jnp.float32)
    refl = _ref_quantize(xl, num_bits=4)
    outl = jax.block_until_ready(
        quantize(xl, QMODE_DET, num_bits=4, force_two_pass=True))
    assert jnp.allclose(outl, refl, atol=1e-5, rtol=1e-5), "large two-pass mismatch"

    print("KERNEL_OK")
</pallas_src>

<mosaic_0001>
module attributes {stable_mosaic.version = 11 : i64} {
  func.func @_fused_det_kernel(%arg0: memref<16x128xf32, #tpu.memory_space<vmem>>, %arg1: memref<16x128xf32, #tpu.memory_space<vmem>>) attributes {dimension_semantics = [], scalar_prefetch = 0 : i64, scratch_operands = 0 : i64, tpu.core_type = #tpu.core_type<tc>} {
    %c0 = arith.constant 0 : index
    %c0_0 = arith.constant 0 : index
    %0 = vector.load %arg0[%c0, %c0_0] : memref<16x128xf32, #tpu.memory_space<vmem>>, vector<16x128xf32>
    %1 = vector.shape_cast %0 : vector<16x128xf32> to vector<1x16x128xf32>
    %cst = arith.constant dense<0xFF800000> : vector<1xf32>
    %2 = vector.multi_reduction <maximumf>, %1, %cst [1, 2] : vector<1x16x128xf32> to vector<1xf32>
    %3 = vector.shape_cast %2 : vector<1xf32> to vector<1x1x1xf32>
    %4 = vector.extract %3[0, 0, 0] : f32 from vector<1x1x1xf32>
    %5 = vector.shape_cast %0 : vector<16x128xf32> to vector<1x16x128xf32>
    %cst_1 = arith.constant dense<0x7F800000> : vector<1xf32>
    %6 = vector.multi_reduction <minimumf>, %5, %cst_1 [1, 2] : vector<1x16x128xf32> to vector<1xf32>
    %7 = vector.shape_cast %6 : vector<1xf32> to vector<1x1x1xf32>
    %8 = vector.extract %7[0, 0, 0] : f32 from vector<1x1x1xf32>
    %9 = arith.subf %4, %8 : f32
    %cst_2 = arith.constant 1.500000e+01 : f32
    %10 = arith.divf %cst_2, %9 : f32
    %11 = vector.broadcast %10 : f32 to vector<16x128xf32>
    %12 = arith.mulf %0, %11 : vector<16x128xf32>
    %cst_3 = arith.constant -9.000000e+00 : f32
    %cst_4 = arith.constant 8.000000e+00 : f32
    %13 = vector.broadcast %cst_3 : f32 to vector<16x128xf32>
    %14 = arith.maximumf %13, %12 : vector<16x128xf32>
    %15 = vector.broadcast %cst_4 : f32 to vector<16x128xf32>
    %16 = arith.minimumf %15, %14 : vector<16x128xf32>
    %17 = math.roundeven %16 : vector<16x128xf32>
    %18 = vector.broadcast %10 : f32 to vector<16x128xf32>
    %19 = arith.divf %17, %18 : vector<16x128xf32>
    %c0_5 = arith.constant 0 : index
    %c0_6 = arith.constant 0 : index
    %20 = vector.load %arg1[%c0_5, %c0_6] : memref<16x128xf32, #tpu.memory_space<vmem>>, vector<16x128xf32>
    tpu.vector_store %arg1[%c0_5, %c0_6], %19 {strides = array<i32>} : memref<16x128xf32, #tpu.memory_space<vmem>>, vector<16x128xf32>,
    return
  }
}

</mosaic_0001>

<bundles_post_ra>
// kernel: tpu_custom_call.1
= control target key start
LH: loop header
LB: loop body
LE: loop exit
PB: predicated region body
PF: predicated region fallthrough
CT: control target
= control target key end

     0   :  { %6 = vsyncpa [#allocation3], 0  ;;  %s189_s0 = inlined_call_operand.hbm [shape: f32[16,128], index: 0, kind: input, shape index: {}]   ;;  %s190_s1 = inlined_call_operand.hbm [shape: f32[16,128], index: 1, kind: output, shape index: {}]  }
   0x1   :  { %7 = vsyncpa [#allocation4], 0  ;;  %s145_s6 = smov [#allocation2]   ;;  %s97_s10 = scalar_lea.hbm %s189_s0, 256 }
   0x2   :  { %s13_s7 = sshll.u32 %s145_s6, 4  ;;  %p98_p0 = scmp.ne.s32.totalorder %s189_s0, %s97_s10  ;;  %s14_s7 = int_to_ptr.vmem [resolvable:$true] %s13_s7 }
   0x3   :  { %p101_p1 = scmp.lt.u32.totalorder %s97_s10, %s189_s0 }
   0x5   :  { %p103_p2 = pnand %p101_p1, %p98_p0 }
   0x7   :  { %106 = shalt.err (!%p103_p2)
}
   0x8   :  { %s107_s15 = scalar_lea.vmem %s14_s7, 256  ;;  %p112_p4 = scmp.lt.s32.totalorder %s14_s7, %s14_s7 }
   0x9   :  { %p108_p3 = scmp.ne.s32.totalorder %s14_s7, %s107_s15  ;;  %p113_p5 = scmp.lt.s32.totalorder %s107_s15, %s107_s15 }
   0xb   :  { %p114_p6 = por %p113_p5, %p112_p4 }
   0xd   :  { %p115_p7 = pnand %p114_p6, %p108_p3 }
   0xf   :  { %118 = shalt.err (!%p115_p7)
}
  0x10   :  { %s146_s16 = smov 128   ;;  %s147_s17 = smov 8  }
  0x11   :  { %19 = dma.hbm_to_vmem [thread:$0]  %s189_s0, 256, %s14_s7, [#allocation3], %s146_s16, %s146_s16, %s147_s17  }
  0x12   :  { %141 = dma.done.wait [#allocation3], 256  }
  0x13   :  { %142 = vsyncadd [#allocation3], 4294967040  ;;  %v23_v0 = vld [vmem:[#allocation2] sm:$0xff]  ;;  %v24_v1 = vld [vmem:[#allocation2 + $0x8] sm:$0xff]  ;;  %s148_s24 = smov [#allocation5]  }
  0x14   :  { %v25_v2 = vmax.f32 %v23_v0, %v24_v1  ;;  %v35_v3 = vmin.f32 %v23_v0, %v24_v1  ;;  %s69_s25 = sshll.u32 %s148_s24, 4  ;;  %s70_s25 = int_to_ptr.vmem [resolvable:$true] %s69_s25 }
  0x15   :  { %s119_s26 = scalar_lea.vmem %s70_s25, 256  ;;  %p124_p9 = scmp.lt.s32.totalorder %s70_s25, %s70_s25 }
  0x16   :  { %26 = vmax.xlane.f32.xlu0 %v25_v2  ;;  %p120_p8 = scmp.ne.s32.totalorder %s70_s25, %s119_s26  ;;  %p125_p10 = scmp.lt.s32.totalorder %s119_s26, %s119_s26 }
  0x18   :  { %p126_p11 = por %p125_p10, %p124_p9 }
  0x1a   :  { %36 = vmin.xlane.f32.xlu0 %v35_v3  ;;  %p127_p12 = pnand %p126_p11, %p120_p8 }
  0xa3   :  { %v27_v4 = vpop.xlane.xlu0 %26 }
  0xa4   :  { %v28_v5 = vrot.slane %v27_v4, 4 }
  0xa6   :  { %v29_v6 = vmax.f32 %v27_v4, %v28_v5 }
  0xa7   :  { %v37_v7 = vpop.xlane.xlu0 %36 }
  0xa8   :  { %v30_v8 = vrot.slane %v29_v6, 2  ;;  %v38_v9 = vrot.slane %v37_v7, 4 }
  0xaa   :  { %v39_v10 = vmin.f32 %v37_v7, %v38_v9  ;;  %v31_v11 = vmax.f32 %v29_v6, %v30_v8 }
  0xac   :  { %v40_v12 = vrot.slane %v39_v10, 2  ;;  %v32_v13 = vrot.slane %v31_v11, 1 }
  0xae   :  { %v41_v14 = vmin.f32 %v39_v10, %v40_v12  ;;  %v33_v15 = vmax.f32 %v31_v11, %v32_v13 }
  0xb0   :  { %81 = vpush %v33_v15  ;;  %v42_v16 = vrot.slane %v41_v14, 1 }
  0xb2   :  { %v43_v17 = vmin.f32 %v41_v14, %v42_v16 }
  0xb4   :  { %83 = vpush %v43_v17 }
  0xe1   :  { %s82_s0 = spop %81 }
  0xe5   :  { %s84_s20 = spop %83 }
  0xe6   :  { %s45_s21 = ssub.f32 %s82_s0, %s84_s20 }
  0xe8   :  { %v46_v18 = vstv %s45_s21 }
  0xe9   :  { %93 = vrcp.f32 %v46_v18 }
  0xf3   :  { %v94_v19 = vpop.eup %93 }
  0xf4   :  { %85 = vpush %v94_v19 }
 0x125   :  { %s86_s22 = spop %85 }
 0x126   :  { %s49_s23 = smul.f32 15.0, %s86_s22 }
 0x128   :  { %v50_v20 = vstv %s49_s23 }
 0x129   :  { %v51_v21 = vmul.f32 %v50_v20, %v23_v0  ;;  %v52_v22 = vmul.f32 %v50_v20, %v24_v1  ;;  %95 = vrcp.f32 %v50_v20 }
 0x12b   :  { %v53_v23 = vmax.f32 %v51_v21, -9.0  ;;  %v54_v24 = vmax.f32 %v52_v22, -9.0 }
 0x12d   :  { %v55_v25 = vmin.f32 %v53_v23, 8.0  ;;  %v56_v26 = vmin.f32 %v54_v24, 8.0 }
 0x12f   :  { %v87_v27 = vround.rtne.f32 %v55_v25  ;;  %v88_v28 = vround.rtne.f32 %v56_v26 }
 0x133   :  { %v96_v29 = vpop.eup %95 }
 0x134   :  { %v60_v30 = vmul.f32 %v96_v29, %v87_v27  ;;  %v61_v31 = vmul.f32 %v96_v29, %v88_v28 }
 0x136   :  { %62 = vst [vmem:[#allocation5] sm:$0xff] %v60_v30  ;;  %63 = vst [vmem:[#allocation5 + $0x8] sm:$0xff] %v61_v31 }
 0x137   :  { %130 = shalt.err (!%p127_p12)
}
 0x138   :  { %s131_s29 = scalar_lea.hbm %s190_s1, 256 }
 0x139   :  { %p132_p13 = scmp.ne.s32.totalorder %s190_s1, %s131_s29  ;;  %p135_p0 = scmp.lt.u32.totalorder %s131_s29, %s190_s1 }
 0x13b   :  { %p137_p1 = pnand %p135_p0, %p132_p13 }
 0x13d   :  { %140 = shalt.err (!%p137_p1)
}
 0x13e   :  { %75 = dma.vmem_to_hbm [thread:$0]  %s70_s25, 256, %s190_s1, [#allocation4], %s146_s16, %s146_s16, %s147_s17  }
 0x13f   :  { %143 = dma.done.wait [#allocation4], 256  }
 0x140   :  { %144 = vsyncadd [#allocation4], 4294967040 }
 0x141   :  { %79 = vsyncpa [#allocation3], 1 }
 0x142   :  { %80 = vsyncpa [#allocation4], 1 }

</bundles_post_ra>
